<compile_context>
chip_gen: v7x
topology: tpu7x:2x2x1
jax: 0.10.0
libtpu: 0.0.40
codegen_flags: <defaults>
</compile_context>

<pallas_src>
import functools

import jax
import jax.numpy as jnp
from jax.experimental import pallas as pl
from jax.experimental.pallas import tpu as pltpu


def _round_up(v, m):
    return ((v + m - 1) // m) * m


def _hypernet_kernel(x_ref, w1t_ref, b1_ref, a1_ref, b2a_ref, waug_ref, o_ref,
                     *, hidden, compute_dtype):
    """Process R rows.

    x_ref    : (R, E)       input rows (any float dtype)
    w1t_ref  : (E, H)       fc1 weight^T                          (compute_dtype)
    b1_ref   : (1, H)       fc1 bias                              (f32)
    a1_ref   : (E, 4H)      A[e, j*H+h] = W2[e*4+j, h]            (compute_dtype)
    b2a_ref  : (E, 4)       b2a[e, j]   = b2[e*4+j]               (compute_dtype)
    waug_ref : (4H+4, E)    rows e*H+h -> W2[4E+e*E+k, h],
                            rows 4H+e  -> b2[4E+e*E+k]            (compute_dtype)
    o_ref    : (R, E)       output rows
    """
    H = hidden
    x = x_ref[...].astype(compute_dtype)          # single copy of x (MXU operand)

    # ---- generate_weights (fc1 -> relu), hypernet hidden activations ----
    h = jnp.dot(x, w1t_ref[...], preferred_element_type=jnp.float32)
    h = jnp.maximum(h + b1_ref[...], 0.0)         # (R, H) f32

    # ---- main-network layer 1 (restructured to a full K=E MXU dot) ----
    #   T1[r, j*H+h'] = sum_e x[r,e] * W2[e*4+j, h']
    t1 = jnp.dot(x, a1_ref[...], preferred_element_type=jnp.float32)   # (R, 4H)
    #   xb[r, j]      = sum_e x[r,e] * b2[e*4+j]
    xb = jnp.dot(x, b2a_ref[...], preferred_element_type=jnp.float32)  # (R, 4)

    # y1[:, j] = relu( sum_h h * T1[:, j-block] + xb[:, j] ), and at the same
    # time assemble z_aug = [y1_0*h | y1_1*h | y1_2*h | y1_3*h | y1]  (R, 4H+4)
    z_pieces = []
    y1_cols = []
    for j in range(4):
        s = jnp.sum(t1[:, j * H:(j + 1) * H] * h, axis=-1, keepdims=True)  # (R,1)
        y1_j = jnp.maximum(s + xb[:, j:j + 1], 0.0)                        # (R,1)
        z_pieces.append(y1_j * h)                                          # (R,H)
        y1_cols.append(y1_j)
    z_aug = jnp.concatenate(z_pieces + y1_cols, axis=1)                    # (R,4H+4)

    # ---- main-network layer 2 (single K=4H+4 MXU dot, bias folded in) ----
    out = jnp.dot(z_aug.astype(compute_dtype), waug_ref[...],
                  preferred_element_type=jnp.float32)                      # (R, E)
    o_ref[...] = jnp.maximum(out, 0.0).astype(o_ref.dtype)


def hypernet_forward(x, params, *, rows_per_block=512,
                     compute_dtype=jnp.bfloat16,
                     vmem_limit_bytes=32 * 1024 * 1024):
    """x: (B, C, E) float -> (B, C, E) same dtype as x."""
    B, C, E = x.shape
    W1, b1, W2, b2 = params["W1"], params["b1"], params["W2"], params["b2"]
    H = W1.shape[0]
    assert W2.shape[0] == 8 * E and W2.shape[1] == H, (
        "fc2 must map hidden -> E*4 + 4*E generated weights")

    # fc1 weights.
    w1t = W1.T.astype(compute_dtype)                        # (E, H)
    b1r = b1.reshape(1, H).astype(jnp.float32)              # (1, H)

    # Layer-1 generated-weight matrix, regrouped so the kernel contracts over
    # E at full MXU depth:  a1[e, j*H + h] = W2[e*4 + j, h].
    a1 = W2[:4 * E].reshape(E, 4 * H).astype(compute_dtype)         # (E, 4H)
    b2a = b2[:4 * E].reshape(E, 4).astype(compute_dtype)            # (E, 4)

    # Layer-2 generated-weight matrix (+bias rows), regrouped so the kernel
    # contracts z = outer(y1, h) over 4H (+4 bias columns) in one dot:
    #   waug[e*H + h, k] = W2[4E + e*E + k, h] ;  waug[4H + e, k] = b2[4E + e*E + k]
    w2b = jnp.transpose(W2[4 * E:].reshape(4, E, H), (0, 2, 1)).reshape(4 * H, E)
    b2b = b2[4 * E:].reshape(4, E)
    waug = jnp.concatenate([w2b, b2b], axis=0).astype(compute_dtype)  # (4H+4, E)

    # Row-block size: large enough to amortize ~0.35us/step grid overhead,
    # small enough to fit VMEM; ensure >= 2 grid steps whenever possible so a
    # megacore part (v7x, 2 TCs) gets balanced work with ("parallel",).
    N = B * C
    R = max(8, _round_up(int(rows_per_block), 8))
    if N < 16:
        R = _round_up(max(N, 1), 8)                # single tiny step
    elif N < 2 * R:
        R = _round_up((N + 1) // 2, 8)             # two balanced steps
    N_pad = _round_up(N, R)

    xf = x.reshape(N, E)
    if N_pad != N:
        # Zero-padded rows provably produce zero outputs and are sliced off.
        xf = jnp.pad(xf, ((0, N_pad - N), (0, 0)))

    out = pl.pallas_call(
        functools.partial(_hypernet_kernel, hidden=H, compute_dtype=compute_dtype),
        out_shape=jax.ShapeDtypeStruct((N_pad, E), x.dtype),
        grid_spec=pltpu.PrefetchScalarGridSpec(
            num_scalar_prefetch=0,
            grid=(N_pad // R,),
            in_specs=[
                pl.BlockSpec((R, E), lambda i: (i, 0)),           # x rows
                pl.BlockSpec((E, H), lambda i: (0, 0)),           # fc1 W^T
                pl.BlockSpec((1, H), lambda i: (0, 0)),           # fc1 bias
                pl.BlockSpec((E, 4 * H), lambda i: (0, 0)),       # layer-1 gen W
                pl.BlockSpec((E, 4), lambda i: (0, 0)),           # layer-1 gen bias
                pl.BlockSpec((4 * H + 4, E), lambda i: (0, 0)),   # layer-2 gen W+bias
            ],
            out_specs=pl.BlockSpec((R, E), lambda i: (i, 0)),
        ),
        compiler_params=pltpu.CompilerParams(
            dimension_semantics=("parallel",),
            vmem_limit_bytes=vmem_limit_bytes),
    )(xf, w1t, b1r, a1, b2a, waug)

    return out[:N].reshape(B, C, E)


def hypernet_reference(x, params):
    """Pure-JAX reference mirroring the PyTorch forward (all f32)."""
    W1, b1, W2, b2 = params["W1"], params["b1"], params["W2"], params["b2"]
    B, C, E = x.shape
    h = jnp.maximum(jnp.einsum("bce,he->bch", x, W1) + b1, 0.0)
    w = jnp.einsum("bch,nh->bcn", h, W2) + b2
    w_a = w[..., : 4 * E].reshape(B, C, E, 4)
    y1 = jnp.maximum(jnp.einsum("bce,bcej->bcj", x, w_a), 0.0)
    w_b = w[..., 4 * E:].reshape(B, C, 4, E)
    y2 = jnp.maximum(jnp.einsum("bce,bcej->bcj", y1, w_b), 0.0)
    return y2


def init_params(key, embed_dim, hidden_size=16):
    num_weights = 8 * embed_dim
    k1, k2, k3, k4 = jax.random.split(key, 4)
    return {
        "W1": jax.random.normal(k1, (hidden_size, embed_dim), jnp.float32) * 0.1,
        "b1": jax.random.normal(k2, (hidden_size,), jnp.float32) * 0.1,
        "W2": jax.random.normal(k3, (num_weights, hidden_size), jnp.float32) * 0.1,
        "b2": jax.random.normal(k4, (num_weights,), jnp.float32) * 0.1,
    }


if __name__ == "__main__":
    # Small shapes consistent with the module (x is (batch, tokens, embed_dim);
    # the module default embed_dim=512 uses the exact same code path).
    B, C, E = 2, 8, 128
    key = jax.random.PRNGKey(0)
    kx, kp, kx2 = jax.random.split(key, 3)
    x = jax.random.normal(kx, (B, C, E), jnp.float32)
    params = init_params(kp, E)

    ref = hypernet_reference(x, params)

    # 1) f32 MXU-operand path: semantic check (tight tolerance, allowing for
    #    the reassociated contraction order of the restructured kernel).
    out_f32 = jax.block_until_ready(
        hypernet_forward(x, params, compute_dtype=jnp.float32))
    assert out_f32.shape == (B, C, E)
    err_f32 = float(jnp.max(jnp.abs(out_f32 - ref)))
    assert jnp.allclose(out_f32, ref, atol=2e-3, rtol=2e-3), (
        "f32 mismatch: max abs err = %g" % err_f32)

    # 2) Default bf16 MXU-operand path (f32 accumulation): relaxed relative check.
    out_bf16 = jax.block_until_ready(hypernet_forward(x, params))
    assert out_bf16.shape == (B, C, E)
    rel_err = float(jnp.max(jnp.abs(out_bf16 - ref)) /
                    (jnp.max(jnp.abs(ref)) + 1e-6))
    assert rel_err < 0.1, "bf16 mismatch: max rel err = %g" % rel_err

    # 3) Ragged row count (exercises row padding + 2-step grid splitting).
    x2 = jax.random.normal(kx2, (3, 7, E), jnp.float32)
    ref2 = hypernet_reference(x2, params)
    out2 = jax.block_until_ready(hypernet_forward(x2, params))
    rel_err2 = float(jnp.max(jnp.abs(out2 - ref2)) /
                     (jnp.max(jnp.abs(ref2)) + 1e-6))
    assert out2.shape == (3, 7, E) and rel_err2 < 0.1, (
        "ragged-shape mismatch: max rel err = %g" % rel_err2)

    print("KERNEL_OK")
</pallas_src>

<mosaic_0001>
module attributes {stable_mosaic.version = 11 : i64} {
  func.func @_hypernet_kernel(%arg0: i32, %arg1: memref<8x128xf32, #tpu.memory_space<vmem>>, %arg2: memref<128x16xf32, #tpu.memory_space<vmem>>, %arg3: memref<1x16xf32, #tpu.memory_space<vmem>>, %arg4: memref<128x64xf32, #tpu.memory_space<vmem>>, %arg5: memref<128x4xf32, #tpu.memory_space<vmem>>, %arg6: memref<68x128xf32, #tpu.memory_space<vmem>>, %arg7: memref<8x128xf32, #tpu.memory_space<vmem>>) attributes {dimension_semantics = [#tpu.dimension_semantics<parallel>], iteration_bounds = array<i64: 2>, scalar_prefetch = 0 : i64, scratch_operands = 0 : i64, tpu.core_type = #tpu.core_type<tc>, window_params = [{transform_indices = @transform_0, window_bounds = array<i64: 8, 128>}, {pipeline_mode = #tpu.pipeline_mode<synchronous>, transform_indices = @transform_1, window_bounds = array<i64: 128, 16>}, {pipeline_mode = #tpu.pipeline_mode<synchronous>, transform_indices = @transform_2, window_bounds = array<i64: 1, 16>}, {pipeline_mode = #tpu.pipeline_mode<synchronous>, transform_indices = @transform_3, window_bounds = array<i64: 128, 64>}, {pipeline_mode = #tpu.pipeline_mode<synchronous>, transform_indices = @transform_4, window_bounds = array<i64: 128, 4>}, {pipeline_mode = #tpu.pipeline_mode<synchronous>, transform_indices = @transform_5, window_bounds = array<i64: 68, 128>}, {transform_indices = @transform_6, window_bounds = array<i64: 8, 128>}]} {
    %c0 = arith.constant 0 : index
    %c0_0 = arith.constant 0 : index
    %0 = vector.load %arg1[%c0, %c0_0] : memref<8x128xf32, #tpu.memory_space<vmem>>, vector<8x128xf32>
    %c0_1 = arith.constant 0 : index
    %c0_2 = arith.constant 0 : index
    %1 = vector.load %arg2[%c0_1, %c0_2] : memref<128x16xf32, #tpu.memory_space<vmem>>, vector<128x16xf32>
    %cst = arith.constant dense<0.000000e+00> : vector<8x16xf32>
    %2 = tpu.matmul %0, %1, %cst {dimension_numbers = #tpu.dot_dimension_numbers<[1], [0], [0], [1], [0, 0, 1, 1], [], []>} : vector<8x128xf32>, vector<128x16xf32>, vector<8x16xf32> -> vector<8x16xf32>
    %c0_3 = arith.constant 0 : index
    %c0_4 = arith.constant 0 : index
    %3 = vector.load %arg3[%c0_3, %c0_4] : memref<1x16xf32, #tpu.memory_space<vmem>>, vector<1x16xf32>
    %4 = vector.broadcast %3 : vector<1x16xf32> to vector<8x16xf32>
    %5 = arith.addf %2, %4 : vector<8x16xf32>
    %cst_5 = arith.constant 0.000000e+00 : f32
    %6 = vector.broadcast %cst_5 : f32 to vector<8x16xf32>
    %7 = arith.maximumf %5, %6 : vector<8x16xf32>
    %c0_6 = arith.constant 0 : index
    %c0_7 = arith.constant 0 : index
    %8 = vector.load %arg4[%c0_6, %c0_7] : memref<128x64xf32, #tpu.memory_space<vmem>>, vector<128x64xf32>
    %cst_8 = arith.constant dense<0.000000e+00> : vector<8x64xf32>
    %9 = tpu.matmul %0, %8, %cst_8 {dimension_numbers = #tpu.dot_dimension_numbers<[1], [0], [0], [1], [0, 0, 1, 1], [], []>} : vector<8x128xf32>, vector<128x64xf32>, vector<8x64xf32> -> vector<8x64xf32>
    %c0_9 = arith.constant 0 : index
    %c0_10 = arith.constant 0 : index
    %10 = vector.load %arg5[%c0_9, %c0_10] : memref<128x4xf32, #tpu.memory_space<vmem>>, vector<128x4xf32>
    %cst_11 = arith.constant dense<0.000000e+00> : vector<8x4xf32>
    %11 = tpu.matmul %0, %10, %cst_11 {dimension_numbers = #tpu.dot_dimension_numbers<[1], [0], [0], [1], [0, 0, 1, 1], [], []>} : vector<8x128xf32>, vector<128x4xf32>, vector<8x4xf32> -> vector<8x4xf32>
    %12 = vector.extract_strided_slice %9 {offsets = [0, 0], sizes = [8, 16], strides = [1, 1]} : vector<8x64xf32> to vector<8x16xf32>
    %13 = arith.mulf %12, %7 : vector<8x16xf32>
    %cst_12 = arith.constant dense<0.000000e+00> : vector<8xf32>
    %14 = vector.multi_reduction <add>, %13, %cst_12 [1] : vector<8x16xf32> to vector<8xf32>
    %15 = vector.shape_cast %14 : vector<8xf32> to vector<8x1xf32>
    %16 = vector.extract_strided_slice %11 {offsets = [0, 0], sizes = [8, 1], strides = [1, 1]} : vector<8x4xf32> to vector<8x1xf32>
    %17 = arith.addf %15, %16 : vector<8x1xf32>
    %cst_13 = arith.constant 0.000000e+00 : f32
    %18 = vector.broadcast %cst_13 : f32 to vector<8x1xf32>
    %19 = arith.maximumf %17, %18 : vector<8x1xf32>
    %20 = vector.broadcast %19 : vector<8x1xf32> to vector<8x16xf32>
    %21 = arith.mulf %20, %7 : vector<8x16xf32>
    %22 = vector.extract_strided_slice %9 {offsets = [0, 16], sizes = [8, 16], strides = [1, 1]} : vector<8x64xf32> to vector<8x16xf32>
    %23 = arith.mulf %22, %7 : vector<8x16xf32>
    %cst_14 = arith.constant dense<0.000000e+00> : vector<8xf32>
    %24 = vector.multi_reduction <add>, %23, %cst_14 [1] : vector<8x16xf32> to vector<8xf32>
    %25 = vector.shape_cast %24 : vector<8xf32> to vector<8x1xf32>
    %26 = vector.extract_strided_slice %11 {offsets = [0, 1], sizes = [8, 1], strides = [1, 1]} : vector<8x4xf32> to vector<8x1xf32>
    %27 = arith.addf %25, %26 : vector<8x1xf32>
    %cst_15 = arith.constant 0.000000e+00 : f32
    %28 = vector.broadcast %cst_15 : f32 to vector<8x1xf32>
    %29 = arith.maximumf %27, %28 : vector<8x1xf32>
    %30 = vector.broadcast %29 : vector<8x1xf32> to vector<8x16xf32>
    %31 = arith.mulf %30, %7 : vector<8x16xf32>
    %32 = vector.extract_strided_slice %9 {offsets = [0, 32], sizes = [8, 16], strides = [1, 1]} : vector<8x64xf32> to vector<8x16xf32>
    %33 = arith.mulf %32, %7 : vector<8x16xf32>
    %cst_16 = arith.constant dense<0.000000e+00> : vector<8xf32>
    %34 = vector.multi_reduction <add>, %33, %cst_16 [1] : vector<8x16xf32> to vector<8xf32>
    %35 = vector.shape_cast %34 : vector<8xf32> to vector<8x1xf32>
    %36 = vector.extract_strided_slice %11 {offsets = [0, 2], sizes = [8, 1], strides = [1, 1]} : vector<8x4xf32> to vector<8x1xf32>
    %37 = arith.addf %35, %36 : vector<8x1xf32>
    %cst_17 = arith.constant 0.000000e+00 : f32
    %38 = vector.broadcast %cst_17 : f32 to vector<8x1xf32>
    %39 = arith.maximumf %37, %38 : vector<8x1xf32>
    %40 = vector.broadcast %39 : vector<8x1xf32> to vector<8x16xf32>
    %41 = arith.mulf %40, %7 : vector<8x16xf32>
    %42 = vector.extract_strided_slice %9 {offsets = [0, 48], sizes = [8, 16], strides = [1, 1]} : vector<8x64xf32> to vector<8x16xf32>
    %43 = arith.mulf %42, %7 : vector<8x16xf32>
    %cst_18 = arith.constant dense<0.000000e+00> : vector<8xf32>
    %44 = vector.multi_reduction <add>, %43, %cst_18 [1] : vector<8x16xf32> to vector<8xf32>
    %45 = vector.shape_cast %44 : vector<8xf32> to vector<8x1xf32>
    %46 = vector.extract_strided_slice %11 {offsets = [0, 3], sizes = [8, 1], strides = [1, 1]} : vector<8x4xf32> to vector<8x1xf32>
    %47 = arith.addf %45, %46 : vector<8x1xf32>
    %cst_19 = arith.constant 0.000000e+00 : f32
    %48 = vector.broadcast %cst_19 : f32 to vector<8x1xf32>
    %49 = arith.maximumf %47, %48 : vector<8x1xf32>
    %50 = vector.broadcast %49 : vector<8x1xf32> to vector<8x16xf32>
    %51 = arith.mulf %50, %7 : vector<8x16xf32>
    %52 = tpu.concatenate %21, %31, %41, %51, %19, %29, %39, %49 in 1 : vector<8x16xf32>, vector<8x16xf32>, vector<8x16xf32>, vector<8x16xf32>, vector<8x1xf32>, vector<8x1xf32>, vector<8x1xf32>, vector<8x1xf32> -> vector<8x68xf32>
    %c0_20 = arith.constant 0 : index
    %c0_21 = arith.constant 0 : index
    %53 = vector.load %arg6[%c0_20, %c0_21] : memref<68x128xf32, #tpu.memory_space<vmem>>, vector<68x128xf32>
    %cst_22 = arith.constant dense<0.000000e+00> : vector<8x128xf32>
    %54 = tpu.matmul %52, %53, %cst_22 {dimension_numbers = #tpu.dot_dimension_numbers<[1], [0], [0], [1], [0, 0, 1, 1], [], []>} : vector<8x68xf32>, vector<68x128xf32>, vector<8x128xf32> -> vector<8x128xf32>
    %cst_23 = arith.constant 0.000000e+00 : f32
    %55 = vector.broadcast %cst_23 : f32 to vector<8x128xf32>
    %56 = arith.maximumf %54, %55 : vector<8x128xf32>
    %c0_24 = arith.constant 0 : index
    %c0_25 = arith.constant 0 : index
    %57 = vector.load %arg7[%c0_24, %c0_25] : memref<8x128xf32, #tpu.memory_space<vmem>>, vector<8x128xf32>
    tpu.vector_store %arg7[%c0_24, %c0_25], %56 {strides = array<i32>} : memref<8x128xf32, #tpu.memory_space<vmem>>, vector<8x128xf32>,
    return
  }
  func.func @transform_0(%arg0: i32) -> (i32, i32) {
    %c0_i32 = arith.constant 0 : i32
    %c0_i32_0 = arith.constant 0 : i32
    return %arg0, %c0_i32 : i32, i32
  }
  func.func @transform_1(%arg0: i32) -> (i32, i32) {
    %c0_i32 = arith.constant 0 : i32
    %c0_i32_0 = arith.constant 0 : i32
    %c0_i32_1 = arith.constant 0 : i32
    return %c0_i32, %c0_i32_0 : i32, i32
  }
  func.func @transform_2(%arg0: i32) -> (i32, i32) {
    %c0_i32 = arith.constant 0 : i32
    %c0_i32_0 = arith.constant 0 : i32
    %c0_i32_1 = arith.constant 0 : i32
    return %c0_i32, %c0_i32_0 : i32, i32
  }
  func.func @transform_3(%arg0: i32) -> (i32, i32) {
    %c0_i32 = arith.constant 0 : i32
    %c0_i32_0 = arith.constant 0 : i32
    %c0_i32_1 = arith.constant 0 : i32
    return %c0_i32, %c0_i32_0 : i32, i32
  }
  func.func @transform_4(%arg0: i32) -> (i32, i32) {
    %c0_i32 = arith.constant 0 : i32
    %c0_i32_0 = arith.constant 0 : i32
    %c0_i32_1 = arith.constant 0 : i32
    return %c0_i32, %c0_i32_0 : i32, i32
  }
  func.func @transform_5(%arg0: i32) -> (i32, i32) {
    %c0_i32 = arith.constant 0 : i32
    %c0_i32_0 = arith.constant 0 : i32
    %c0_i32_1 = arith.constant 0 : i32
    return %c0_i32, %c0_i32_0 : i32, i32
  }
  func.func @transform_6(%arg0: i32) -> (i32, i32) {
    %c0_i32 = arith.constant 0 : i32
    %c0_i32_0 = arith.constant 0 : i32
    return %arg0, %c0_i32 : i32, i32
  }
}

</mosaic_0001>

<bundles_post_ra>
// kernel: tpu_custom_call.1
= control target key start
LH: loop header
LB: loop body
LE: loop exit
PB: predicated region body
PF: predicated region fallthrough
CT: control target
= control target key end

     0   :  { %11 = vsyncpa [#allocation3], 0  ;;  %s1582_s0 = inlined_call_operand.vmem [shape: f32[16,128], index: 0, kind: input, shape index: {}]   ;;  %s1583_s1 = inlined_call_operand.vmem [shape: f32[128,16], index: 1, kind: input, shape index: {}]   ;;  %s1584_s2 = inlined_call_operand.vmem [shape: f32[1,16], index: 2, kind: input, shape index: {}]   ;;  %s1585_s3 = inlined_call_operand.vmem [shape: f32[128,64], index: 3, kind: input, shape index: {}]   ;;  %s1586_s4 = inlined_call_operand.vmem [shape: f32[128,4], index: 4, kind: input, shape index: {}]   ;;  %s1587_s5 = inlined_call_operand.vmem [shape: f32[68,128], index: 5, kind: input, shape index: {}]   ;;  %s1588_s6 = inlined_call_operand.hbm [shape: f32[16,128], index: 6, kind: output, shape index: {}]  }
   0x1   :  { %13 = vsyncpa [#allocation3 + $0x1], 0  ;;  %s1240_s21 = smov 0   ;;  %s1242_s22 = smov 0  }
   0x2   :  { %s1244_s23 = smov 0   ;;  %s1246_s24 = smov 0  }
   0x3 LB: > { %s1261_s25 = sadd.s32 4294967295, %s1188_s24   ;;  %s784_s26 = sadd.s32 4294967294, %s1188_s24   ;;  %s1188_s24 = sphi %s1246_s24, %s1594_s24   ;;  %s1184_s23 = sphi %s1244_s23, %s1593_s23   ;;  %s1180_s22 = sphi %s1242_s22, %s1592_s22   ;;  %s1176_s21 = sphi %s1240_s21, %s1591_s21  }
   0x4   : > { %s1265_s27 = sadd.s32 1, %s1188_s24   ;;  %s157_s28 = sadd.s32 1, %s1184_s23 }
   0x5   : > { %s154_s29 = ssub.s32 %s1188_s24, %s1265_s27  ;;  %p167_p0 = scmp.ne.s32.totalorder %s1184_s23, %s1180_s22 }
   0x6   : > { %p155_p1 = scmp.eq.s32.totalorder %s154_s29, 0  ;;  %p168_p2 = scmp.eq.s32.totalorder %s1261_s25, 1 }
   0x7   : > { %p173_p3 = scmp.ne.s32.totalorder %s1180_s22, %s1176_s21  ;;  %p174_p4 = scmp.eq.s32.totalorder %s784_s26, 1 }
   0x8   : > { %s1276_s30 = scalar_select %p155_p1, %s1184_s23, %s157_s28  }
   0x9   : > { %p1278_p5 = por %p168_p2, %p167_p0  ;;  %p1282_p6 = por %p174_p4, %p173_p3 }
   0xa   : > { %p787_p7 = scmp.ge.s32.totalorder %s1188_s24, 1  ;;  %p214_p8 = scmp.lt.s32.totalorder %s1188_s24, 3 }
   0xc   : > { %p215_p9 = pnand %p787_p7, %p214_p8 }
   0xd   : > { %v248_v0 = vld [vmem:[%s1583_s1] sm:$0xff] (!%p215_p9)  ;;  %v249_v1 = vld [vmem:[%s1583_s1 + $0x8] sm:$0xff] (!%p215_p9)  ;;  %v250_v2 = vld [vmem:[%s1583_s1 + $0x10] sm:$0xff] (!%p215_p9)  ;;  %v1190_v3 = vmov (!%p215_p9), 0.0|0.0   ;;  %vm1191_vm0 = vmmov (!%p215_p9), 0   ;;  %v1192_v10 = vmov (!%p215_p9), 0.0  }
   0xe   : > { %218 = sbr.rel (%p215_p9) target bundleno = 1129 (0x469), region = 44  ;;  %984 = vmatprep.subr.bf16.mxu0 (!%p215_p9), %v1190_v3  ;;  %v985_v4 = vpack.c.bf16 (!%p215_p9), %v249_v1, %v248_v0  ;;  %1008 = vmatprep.subr.bf16.mxu1 (!%p215_p9), %v1190_v3  ;;  %v251_v5 = vld [vmem:[%s1583_s1 + $0x18] sm:$0xff] (!%p215_p9)  ;;  %v342_v6 = vld [vmem:[%s1585_s3] sm:$0xff] (!%p215_p9)  ;;  %v343_v7 = vld [vmem:[%s1585_s3 + $0x8] sm:$0xff] (!%p215_p9)  ;;  %p243_p10 = scmp.lt.s32.totalorder (!%p215_p9), %s1261_s25, 1  ;;  %vm515_vm1 = vcmask (!%p215_p9), 130048  }
   0xf   : > { %v1009_v8 = vpack.c.bf16 (!%p215_p9), %v343_v7, %v342_v6  ;;  %v344_v9 = vld [vmem:[%s1585_s3 + $0x10] sm:$0xff] (!%p215_p9)  ;;  %890 = vmatprep.mubr.msk.f32.mxu0 (!%p215_p9), %vm1191_vm0, %v1192_v10  ;;  %925 = vmatprep.mubr.msk.f32.mxu1 (!%p215_p9), %vm1191_vm0, %v1192_v10  ;;  %v988_v11 = vpack.c.bf16 (!%p215_p9), %v251_v5, %v250_v2  ;;  %v345_v12 = vld [vmem:[%s1585_s3 + $0x18] sm:$0xff] (!%p215_p9)  ;;  %v252_v13 = vld [vmem:[%s1583_s1 + $0x20] sm:$0xff] (!%p215_p9)  ;;  %s1194_s18 = smov (!%p215_p9), 16   ;;  %s1195_s29 = smov (!%p215_p9), 32   ;;  %vm635_vm2 = vcmask (!%p215_p9), 1043456  }
  0x10   : > { %986 = vmatpush3.bf16.msra.mxu0 (!%p215_p9), %v985_v4  ;;  %v253_v14 = vld [vmem:[%s1583_s1 + $0x28] sm:$0xff] (!%p215_p9)  ;;  %v1012_v15 = vpack.c.bf16 (!%p215_p9), %v345_v12, %v344_v9  ;;  %v346_v16 = vld [vmem:[%s1585_s3 + $0x20] sm:$0xff] (!%p215_p9)  ;;  %v254_v19 = vld [vmem:[%s1583_s1 + $0x30] sm:$0xff] (!%p215_p9)  ;;  %s1196_s13 = smov (!%p215_p9), 112   ;;  %s1197_s14 = smov (!%p215_p9), 80   ;;  %vm610_vm3 = vcmask (!%p215_p9), 261120  }
  0x11   : > { %987 = vmatprep.subr.bf16.mxu0 (!%p215_p9), %v1190_v3  ;;  %1010 = vmatpush3.bf16.msra.mxu1 (!%p215_p9), %v1009_v8  ;;  %v347_v17 = vld [vmem:[%s1585_s3 + $0x28] sm:$0xff] (!%p215_p9)  ;;  %v991_v18 = vpack.c.bf16 (!%p215_p9), %v253_v14, %v252_v13  ;;  %v255_v20 = vld [vmem:[%s1583_s1 + $0x38] sm:$0xff] (!%p215_p9)  ;;  %v348_v22 = vld [vmem:[%s1585_s3 + $0x30] sm:$0xff] (!%p215_p9)  ;;  %s1198_s15 = smov (!%p215_p9), 96   ;;  %s1202_s16 = smov (!%p215_p9), 64   ;;  %vm612_vm4 = vcmask (!%p215_p9), 392192  }
  0x12   : > { %1011 = vmatprep.subr.bf16.mxu1 (!%p215_p9), %v1190_v3  ;;  %v1015_v21 = vpack.c.bf16 (!%p215_p9), %v347_v17, %v346_v16  ;;  %v349_v23 = vld [vmem:[%s1585_s3 + $0x38] sm:$0xff] (!%p215_p9)  ;;  %v994_v24 = vpack.c.bf16 (!%p215_p9), %v255_v20, %v254_v19  ;;  %v256_v25 = vld [vmem:[%s1583_s1 + $0x40] sm:$0xff] (!%p215_p9)  ;;  %v257_v26 = vld [vmem:[%s1583_s1 + $0x48] sm:$0xff] (!%p215_p9)  ;;  %vm614_vm5 = vcmask (!%p215_p9), 523264   ;;  %vm616_vm6 = vcmask (!%p215_p9), 531456  }
  0x13   : > { %v1018_v27 = vpack.c.bf16 (!%p215_p9), %v349_v23, %v348_v22  ;;  %v350_v28 = vld [vmem:[%s1585_s3 + $0x40] sm:$0xff] (!%p215_p9)  ;;  %v351_v29 = vld [vmem:[%s1585_s3 + $0x48] sm:$0xff] (!%p215_p9)  ;;  %v997_v30 = vpack.c.bf16 (!%p215_p9), %v257_v26, %v256_v25  ;;  %v258_v31 = vld [vmem:[%s1583_s1 + $0x50] sm:$0xff] (!%p215_p9)  ;;  %vm618_vm7 = vcmask (!%p215_p9), 539648   ;;  %vm620_vm8 = vcmask (!%p215_p9), 547840  }
  0x14   : > { %989 = vmatpush3.bf16.msra.mxu0 (!%p215_p9), %v988_v11  ;;  %v259_v32 = vld [vmem:[%s1583_s1 + $0x58] sm:$0xff] (!%p215_p9)  ;;  %v1021_v33 = vpack.c.bf16 (!%p215_p9), %v351_v29, %v350_v28  ;;  %v352_v34 = vld [vmem:[%s1585_s3 + $0x50] sm:$0xff] (!%p215_p9)  ;;  %v260_v37 = vld [vmem:[%s1583_s1 + $0x60] sm:$0xff] (!%p215_p9)  ;;  %vm631_vm9 = vcmask (!%p215_p9), 556032  }
  0x15   : > { %990 = vmatprep.subr.bf16.mxu0 %v1190_v3  ;;  %1013 = vmatpush3.bf16.msra.mxu1 %v1012_v15  ;;  %v353_v35 = vld [vmem:[%s1585_s3 + $0x58] sm:$0xff]  ;;  %v1000_v36 = vpack.c.bf16 %v259_v32, %v258_v31  ;;  %v261_v38 = vld [vmem:[%s1583_s1 + $0x68] sm:$0xff]  ;;  %v354_v40 = vld [vmem:[%s1585_s3 + $0x60] sm:$0xff]  ;;  %s244_s20 = scalar_select %p243_p10, %s1261_s25, 1 }
  0x16   : > { %1014 = vmatprep.subr.bf16.mxu1 %v1190_v3  ;;  %v1024_v39 = vpack.c.bf16 %v353_v35, %v352_v34  ;;  %v355_v41 = vld [vmem:[%s1585_s3 + $0x68] sm:$0xff]  ;;  %v1003_v42 = vpack.c.bf16 %v261_v38, %v260_v37  ;;  %v262_v43 = vld [vmem:[%s1583_s1 + $0x70] sm:$0xff]  ;;  %v263_v44 = vld [vmem:[%s1583_s1 + $0x78] sm:$0xff]  ;;  %v1200_v37 = vmov 2  }
  0x17   : > { %v1027_v45 = vpack.c.bf16 %v355_v41, %v354_v40  ;;  %s789_s10 = sshll.u32 %s244_s20, 3  ;;  %v356_v46 = vld [vmem:[%s1585_s3 + $0x70] sm:$0xff]  ;;  %v357_v47 = vld [vmem:[%s1585_s3 + $0x78] sm:$0xff]  ;;  %v1006_v48 = vpack.c.bf16 %v263_v44, %v262_v43  ;;  %v790_v51 = vld [vmem:[%s1584_s2] ss:$0 sm:$0xff]  ;;  %1122 = vset.pattern.permute.xlu0 %v1200_v37 }
  0x18   : > { %992 = vmatpush3.bf16.msra.mxu0 %v991_v18  ;;  %s246_s17 = scalar_lea.vmem %s1582_s0, %s789_s10  ;;  %v1030_v49 = vpack.c.bf16 %v357_v47, %v356_v46  ;;  %v428_v52 = vld [vmem:[%s1586_s4] sm:$0xff]  ;;  %v429_v53 = vld [vmem:[%s1586_s4 + $0x8] sm:$0xff]  ;;  %v430_v55 = vld [vmem:[%s1586_s4 + $0x10] sm:$0xff] }
  0x19   : > { %993 = vmatprep.subr.bf16.mxu0 %v1190_v3  ;;  %1016 = vmatpush3.bf16.msra.mxu1 %v1015_v21  ;;  %v247_v50 = vld [vmem:[%s246_s17] sm:$0xff]  ;;  %v1033_v54 = vpack.c.bf16 %v429_v53, %v428_v52  ;;  %v431_v56 = vld [vmem:[%s1586_s4 + $0x18] sm:$0xff]  ;;  %v433_v1 = vld [vmem:[%s1586_s4 + $0x28] sm:$0xff]  ;;  %s1193_s17 = smov 48  }
  0x1a   : > { %1017 = vmatprep.subr.bf16.mxu1 %v1190_v3  ;;  %v1036_v62 = vpack.c.bf16 %v431_v56, %v430_v55  ;;  %v432_v0 = vld [vmem:[%s1586_s4 + $0x20] sm:$0xff]  ;;  %v434_v4 = vld [vmem:[%s1586_s4 + $0x30] sm:$0xff]  ;;  %v435_v5 = vld [vmem:[%s1586_s4 + $0x38] sm:$0xff] }
  0x1b   : > { %v1039_v2 = vpack.c.bf16 %v433_v1, %v432_v0  ;;  %v1042_v6 = vpack.c.bf16 %v435_v5, %v434_v4  ;;  %v436_v7 = vld [vmem:[%s1586_s4 + $0x40] sm:$0xff]  ;;  %v437_v8 = vld [vmem:[%s1586_s4 + $0x48] sm:$0xff]  ;;  %v438_v11 = vld [vmem:[%s1586_s4 + $0x50] sm:$0xff] }
  0x1c   : > { %995 = vmatpush3.bf16.msra.mxu0 %v994_v24  ;;  %v1045_v9 = vpack.c.bf16 %v437_v8, %v436_v7  ;;  %v439_v12 = vld [vmem:[%s1586_s4 + $0x58] sm:$0xff]  ;;  %v440_v14 = vld [vmem:[%s1586_s4 + $0x60] sm:$0xff]  ;;  %v441_v15 = vld [vmem:[%s1586_s4 + $0x68] sm:$0xff] }
  0x1d   : > { %996 = vmatprep.subr.bf16.mxu0 %v1190_v3  ;;  %1019 = vmatpush3.bf16.msra.mxu1 %v1018_v27  ;;  %v1048_v13 = vpack.c.bf16 %v439_v12, %v438_v11  ;;  %v1051_v16 = vpack.c.bf16 %v441_v15, %v440_v14  ;;  %v442_v17 = vld [vmem:[%s1586_s4 + $0x70] sm:$0xff]  ;;  %v443_v18 = vld [vmem:[%s1586_s4 + $0x78] sm:$0xff]  ;;  %v622_v52 = vld [vmem:[%s1587_s5] sm:$0xff] }
  0x1e   : > { %1020 = vmatprep.subr.bf16.mxu1 %v1190_v3  ;;  %v1054_v19 = vpack.c.bf16 %v443_v18, %v442_v17  ;;  %v623_v53 = vld [vmem:[%s1587_s5 + $0x8] sm:$0xff]  ;;  %v624_v55 = vld [vmem:[%s1587_s5 + $0x10] sm:$0xff]  ;;  %v625_v56 = vld [vmem:[%s1587_s5 + $0x18] sm:$0xff] }
  0x1f   : > { %v630_v4 = vld [vmem:[%s1587_s5 + $0x40] sm:$0xf] }
  0x20   : > { %998 = vmatpush3.bf16.msra.mxu0 %v997_v30 }
  0x21   : > { %999 = vmatprep.subr.bf16.mxu0 %v1190_v3  ;;  %1022 = vmatpush3.bf16.msra.mxu1 %v1021_v33 }
  0x22   : > { %1023 = vmatprep.subr.bf16.mxu1 %v1190_v3 }
  0x24   : > { %1001 = vmatpush3.bf16.msra.mxu0 %v1000_v36  ;;  %v1199_v36 = vmov 1  }
  0x25   : > { %1002 = vmatprep.subr.bf16.mxu0 %v1190_v3  ;;  %1025 = vmatpush3.bf16.msra.mxu1 %v1024_v39 }
  0x26   : > { %1026 = vmatprep.subr.bf16.mxu1 %v1190_v3  ;;  %1121 = vset.pattern.permute.xlu1 %v1199_v36 }
  0x28   : > { %1004 = vmatpush3.bf16.msra.mxu0 %v1003_v42 }
  0x29   : > { %1005 = vmatprep.subr.bf16.mxu0 %v1190_v3  ;;  %1028 = vmatpush3.bf16.msra.mxu1 %v1027_v45 }
  0x2a   : > { %1029 = vmatprep.subr.bf16.mxu1 %v1190_v3 }
  0x2c   : > { %1007 = vmatpush3.bf16.msra.mxu0 %v1006_v48 }
  0x2d   : > { %1031 = vmatpush3.bf16.msra.mxu1 %v1030_v49  ;;  %1032 = vmatprep.subr.bf16.mxu0 %v1190_v3  ;;  %v1201_v49 = vmov 3  }
  0x2e   : > { %1056 = vmatprep.subr.bf16.mxu1 %v1190_v3 }
  0x2f   : > { %891 = vmatmul.mubr.f32.vlgmr.msra.gmra.mrb[0].mxu0 %v247_v50 }
  0x30   : > { %926 = vmatmul.mubr.f32.vlgmr.msra.gmra.mrb[0].mxu1 %v247_v50  ;;  %960 = vmatprep.mubr.msk.f32.mxu0 %vm1191_vm0, %v1192_v10 }
  0x31   : > { %981 = vmatprep.mubr.msk.f32.mxu1 %vm1191_vm0, %v1192_v10  ;;  %1034 = vmatpush3.bf16.msra.mxu0 %v1033_v54  ;;  %v1057_v54 = vpack.c.bf16 %v623_v53, %v622_v52 }
  0x32   : > { %1035 = vmatprep.subr.bf16.mxu0 %v1190_v3 }
  0x33   : > { %1058 = vmatpush3.bf16.msra.mxu1 %v1057_v54 }
  0x34   : > { %1059 = vmatprep.subr.bf16.mxu1 %v1190_v3 }
  0x35   : > { %1037 = vmatpush3.bf16.msra.mxu0 %v1036_v62  ;;  %v629_v62 = vld [vmem:[%s1587_s5 + $0x38] sm:$0xff] }
  0x36   : > { %1038 = vmatprep.subr.bf16.mxu0 %v1190_v3 }
  0x39   : > { %1040 = vmatpush3.bf16.msra.mxu0 %v1039_v2 }
  0x3a   : > { %1041 = vmatprep.subr.bf16.mxu0 %v1190_v3 }
  0x3d   : > { %1043 = vmatpush3.bf16.msra.mxu0 %v1042_v6 }
  0x3e   : > { %1044 = vmatprep.subr.bf16.mxu0 %v1190_v3 }
  0x41   : > { %1046 = vmatpush3.bf16.msra.mxu0 %v1045_v9 }
  0x42   : > { %1047 = vmatprep.subr.bf16.mxu0 %v1190_v3 }
  0x45   : > { %1049 = vmatpush3.bf16.msra.mxu0 %v1048_v13 }
  0x46   : > { %1050 = vmatprep.subr.bf16.mxu0 %v1190_v3 }
  0x49   : > { %1052 = vmatpush3.bf16.msra.mxu0 %v1051_v16 }
  0x4a   : > { %1053 = vmatprep.subr.bf16.mxu0 %v1190_v3 }
  0x4d   : > { %1055 = vmatpush3.bf16.msra.mxu0 %v1054_v19 }
  0x50   : > { %961 = vmatmul.mubr.f32.vlgmr.msra.gmra.mrb[2].mxu0 %v247_v50 }
 0x102   : > { %v337_v57 = vpop.f32.mrb[0].mxu0 }
 0x103   : > { %v338_v58 = vadd.f32 %v790_v51, %v337_v57  ;;  %v892_v59 = vpop.f32.mrb[1].mxu0  ;;  %v1430_v60 = vpop.f32.mrb[0].mxu1  ;;  %v1203_v51 = vmov 0   ;;  %v1060_v57 = vpack.c.bf16 %v625_v56, %v624_v55 }
 0x104   : > { %v927_v61 = vpop.f32.mrb[1].mxu1  ;;  %v627_v59 = vld [vmem:[%s1587_s5 + $0x28] sm:$0xff] }
 0x105   : > { %v1433_v63 = vmax.f32 %v338_v58, 0.0  ;;  %1061 = vmatpush3.bf16.msra.mxu1 %v1060_v57  ;;  %v626_v58 = vld [vmem:[%s1587_s5 + $0x20] sm:$0xff]  ;;  %v628_v61 = vld [vmem:[%s1587_s5 + $0x30] sm:$0xff] }
 0x106   : > { %1062 = vmatprep.subr.bf16.mxu1 %v1190_v3  ;;  %v1066_v0 = vpack.c.bf16 %v629_v62, %v628_v61 }
 0x107   : > { %566 = vrot.lane.b32.xlu1 %v1433_v63, %s1193_s17  ;;  %528 = vrot.lane.b32.xlu0 %v1433_v63, %s1194_s18  ;;  %v514_v32 = vmul.f32 %v1430_v60, %v1433_v63 }
 0x109   : > { %v516_v34 = vsel %vm515_vm1, %v514_v32, 0.0 }
 0x10b   : > { %547 = vrot.lane.b32.xlu0 %v1433_v63, %s1195_s29 }
 0x123   : > { %v510_v33 = vpop.f32.mrb[2].mxu0 }
 0x124   : > { %v962_v35 = vpop.f32.mrb[3].mxu0 }
 0x179   : > { %v529_v20 = vpop.permute.xlu0 %528  ;;  %v567_v22 = vpop.permute.xlu1 %566 }
 0x17a   : > { %v531_v21 = vmul.f32 %v529_v20, %v1430_v60  ;;  %v569_v24 = vmul.f32 %v567_v22, %v1430_v60 }
 0x17c   : > { %533 = vrot.lane.b32.xlu1 %v531_v21, %s1196_s13 }
 0x17d   : > { %v548_v23 = vpop.permute.xlu0 %547 }
 0x17e   : > { %v550_v25 = vmul.f32 %v548_v23, %v1430_v60  ;;  %v1063_v60 = vpack.c.bf16 %v627_v59, %v626_v58 }
 0x180   : > { %571 = vrot.lane.b32.xlu1 %v569_v24, %s1197_s14  ;;  %552 = vrot.lane.b32.xlu0 %v550_v25, %s1198_s15 }
 0x181   : > { %1064 = vmatpush3.bf16.msra.mxu1 %v1063_v60 }
 0x182   : > { %1065 = vmatprep.subr.bf16.mxu1 %v1190_v3 }
 0x185   : > { %1067 = vmatpush3.bf16.msra.mxu1 %v1066_v0 }
 0x186   : > { %979 = vmatprep.subr.mxu1 %v1192_v10 }
 0x189   : > { %980 = vmatpush3.msk.msra.mxu1 %vm635_vm2, %v630_v4 }
 0x1ee   : > { %v534_v26 = vpop.permute.xlu1 %533 }
 0x1ef   : > { %v536_v27 = vsel %vm515_vm1, %v534_v26, 0.0 }
 0x1f0   : > { %537 = vadd.xlane.f32.xlu0 %v536_v27 }
 0x1f2   : > { %v572_v28 = vpop.permute.xlu1 %571  ;;  %v553_v29 = vpop.permute.xlu0 %552 }
 0x1f3   : > { %v574_v30 = vsel %vm515_vm1, %v572_v28, 0.0  ;;  %v555_v31 = vsel %vm515_vm1, %v553_v29, 0.0 }
 0x1f4   : > { %575 = vadd.xlane.f32.xlu0 %v574_v30  ;;  %556 = vadd.xlane.f32.xlu1 %v555_v31 }
 0x1f8   : > { %517 = vadd.xlane.f32.xlu0 %v516_v34 }
 0x27d   : > { %v538_v38 = vpop.xlane.xlu0 %537 }
 0x27e   : > { %v539_v39 = vadd.f32 %v538_v38, %v510_v33 }
 0x280   : > { %v540_v40 = vmax.f32 %v539_v39, 0.0 }
 0x281   : > { %v557_v41 = vpop.xlane.xlu1 %556  ;;  %v576_v42 = vpop.xlane.xlu0 %575 }
 0x282   : > { %v558_v43 = vadd.f32 %v557_v41, %v510_v33  ;;  %v577_v44 = vadd.f32 %v576_v42, %v510_v33  ;;  %543 = vperm.xlu1 %1121, %v540_v40  }
 0x284   : > { %v559_v45 = vmax.f32 %v558_v43, 0.0  ;;  %v578_v46 = vmax.f32 %v577_v44, 0.0 }
 0x285   : > { %v518_v47 = vpop.xlane.xlu0 %517 }
 0x286   : > { %v519_v48 = vadd.f32 %v518_v47, %v510_v33  ;;  %562 = vperm.xlu0 %1122, %v559_v45   ;;  %1123 = vset.pattern.permute.xlu1 %v1201_v49 }
 0x287   : > { %581 = vperm.xlu1 %1123, %v578_v46  }
 0x288   : > { %v520_v50 = vmax.f32 %v519_v48, 0.0 }
 0x28a   : > { %606 = vrot.lane.b32.xlu0 %v578_v46, %s1202_s16 }
 0x28b   : > { %1124 = vset.pattern.permute.xlu1 %v1203_v51  ;;  %1125 = vset.pattern.permute.xlu0 %v1201_v49 }
 0x28c   : > { %523 = vperm.xlu1 %1124, %v520_v50  }
 0x290   : > { %597 = vrot.lane.b32.xlu1 %v520_v50, %s1202_s16 }
 0x294   : > { %600 = vrot.lane.b32.xlu1 %v540_v40, %s1202_s16 }
 0x301   : > { %v544_v1 = vpop.permute.xlu1 %543 }
 0x302   : > { %v546_v2 = vmul.f32 %v544_v1, %v1433_v63 }
 0x304   : > { %586 = vrot.lane.b32.xlu1 %v546_v2, %s1194_s18 }
 0x305   : > { %v563_v3 = vpop.permute.xlu0 %562 }
 0x306   : > { %v565_v5 = vmul.f32 %v563_v3, %v1433_v63  ;;  %v582_v6 = vpop.permute.xlu1 %581 }
 0x307   : > { %v584_v7 = vmul.f32 %v582_v6, %v1433_v63 }
 0x308   : > { %590 = vrot.lane.b32.xlu1 %v565_v5, %s1195_s29  ;;  %s794_s29 = sshll.u32 %s1261_s25, 7  ;;  %s1204_s25 = smov [#allocation2]  }
 0x309   : > { %v607_v21 = vpop.permute.xlu0 %606  ;;  %s1540_s15 = scalar_lea.hbm %s1588_s6, %s794_s29  ;;  %s1130_s26 = sshll.u32 %s1204_s25, 4  ;;  %s1131_s26 = int_to_ptr.vmem [resolvable:$false] %s1130_s26 }
 0x30a   : > { %s1132_s28 = scalar_lea.vmem %s1131_s26, 256 }
 0x30b   : > { %v524_v10 = vpop.permute.xlu1 %523 }
 0x30c   : > { %594 = vrot.lane.b32.xlu1 %v584_v7, %s1193_s17  ;;  %v526_v13 = vmul.f32 %v524_v10, %v1433_v63  ;;  %s240_s17 = sand.u32 1, %s1180_s22  }
 0x30d   : > { %s788_s18 = sshll.u32 %s240_s17, 3  ;;  %s712_s19 = scalar_lea.sflag [#allocation3], %s240_s17 }
 0x30f   : > { %v598_v8 = vpop.permute.xlu1 %597 }
 0x310   : > { %603 = vrot.lane.b32.xlu1 %v559_v45, %s1202_s16  ;;  %s242_s16 = scalar_lea.vmem [#allocation2], %s788_s18 }
 0x311   : > { %s725_s12 = sshll.u32 %s242_s16, 4  ;;  %s1542_s12 = int_to_ptr.vmem [resolvable:$true] %s725_s12 }
 0x312   : > { %s1126_s20 = scalar_lea.vmem %s1542_s12, 128  ;;  %p1133_p0 = scmp.lt.s32.totalorder %s1542_s12, %s1131_s26 }
 0x313   : > { %v601_v9 = vpop.permute.xlu1 %600  ;;  %p1127_p11 = scmp.ne.s32.totalorder %s1542_s12, %s1126_s20  ;;  %p1134_p1 = scmp.lt.s32.totalorder %s1132_s28, %s1126_s20 }
 0x315   : > { %p1128_p12 = pnand %p1127_p11, %p1278_p5  ;;  %p1135_p2 = por %p1134_p1, %p1133_p0 }
 0x317   : > { %p1129_p13 = pneg %p1128_p12 }
 0x319   : > { %p1136_p3 = pnand %p1135_p2, %p1129_p13 }
 0x376   : > { %v587_v11 = vpop.permute.xlu1 %586 }
 0x377   : > { %v609_v14 = vsel %vm515_vm1, %v526_v13, %v587_v11 }
 0x37a   : > { %v591_v12 = vpop.permute.xlu1 %590 }
 0x37b   : > { %v611_v15 = vsel %vm610_vm3, %v609_v14, %v591_v12 }
 0x37e   : > { %v595_v16 = vpop.permute.xlu1 %594 }
 0x37f   : > { %v613_v17 = vsel %vm612_vm4, %v611_v15, %v595_v16 }
 0x380   : > { %v615_v18 = vsel %vm614_vm5, %v613_v17, %v598_v8 }
 0x381   : > { %v617_v19 = vsel %vm616_vm6, %v615_v18, %v601_v9 }
 0x382   : > { %v604_v20 = vpop.permute.xlu1 %603 }
 0x383   : > { %v619_v22 = vsel %vm618_vm7, %v617_v19, %v604_v20 }
 0x384   : > { %v621_v63 = vsel %vm620_vm8, %v619_v22, %v607_v21 }
 0x385   : > { %982 = vmatmul.mubr.msk.f32.vlgmr.msra.gmra.mrb[2].mxu1 %vm631_vm9, %v621_v63 }
 0x458   : > { %v705_v23 = vpop.f32.mrb[2].mxu1 }
 0x459   : > { %v709_v24 = vmax.f32 %v705_v23, 0.0  ;;  %v983_v25 = vpop.f32.mrb[3].mxu1 }
 0x45b   : > { %710 = vst [vmem:[%s242_s16] sm:$0xff] %v709_v24 }
 0x45c   : > { %1139 = shalt.err (!%p1136_p3)
}
 0x45d   : > { %s1140_s9 = scalar_lea.hbm %s1540_s15, 128  ;;  %s1144_s17 = scalar_lea.hbm %s1588_s6, 256 }
 0x45e   : > { %p1141_p4 = scmp.ne.s32.totalorder %s1540_s15, %s1140_s9  ;;  %p1145_p9 = scmp.lt.u32.totalorder %s1540_s15, %s1588_s6 }
 0x45f   : > { %p1146_p10 = scmp.lt.u32.totalorder %s1144_s17, %s1140_s9  ;;  %p1148_p12 = scmp.lt.u32.totalorder %s1140_s9, %s1540_s15 }
 0x460   : > { %p1142_p7 = pnand %p1141_p4, %p1278_p5 }
 0x461   : > { %p1147_p11 = por %p1146_p10, %p1145_p9 }
 0x462   : > { %p1143_p8 = pneg %p1142_p7 }
 0x463   : > { %p1149_p13 = por %p1148_p12, %p1147_p11 }
 0x465   : > { %p1150_p0 = pnand %p1149_p13, %p1143_p8 }
 0x467   : > { %1153 = shalt.err (!%p1150_p0)
}
 0x468   : > { %1068 = dma.vmem_to_hbm [thread:$0]  (%p1278_p5), %s1542_s12, 128, %s1540_s15, %s712_s19  }
 0x469 PF: > { %p1074_p1 = scmp.ge.s32.totalorder %s1188_s24, 2  ;;  %s737_s16 = sand.u32 1, %s1176_s21  }
 0x46a   : > { %s738_s13 = scalar_lea.sflag [#allocation3], %s737_s16 }
 0x46b   : > { %p1071_p2 = pnand %p1074_p1, %p1282_p6 }
 0x46d   : > { %1171 = dma.done.wait (!%p1071_p2), %s738_s13, 128  }
 0x46e   : > { %1173 = vsyncadd (!%p1071_p2), %s738_s13, 4294967168  ;;  %p16_p3 = scmp.ge.s32.totalorder %s1265_s27, 4   ;;  %s1591_s21 = smov %s1180_s22 }
 0x46f   : > { %s1592_s22 = smov %s1184_s23  ;;  %s1593_s23 = smov %s1276_s30 }
 0x470   : > { %s1594_s24 = smov %s1265_s27  ;;  %18 = sbr.rel (!%p16_p3) target bundleno = 3 (0x3), region = 79 }
 0x477   :  { %743 = vsyncpa [#allocation3], 1 }
 0x478   :  { %745 = vsyncpa [#allocation3 + $0x1], 1 }

</bundles_post_ra>
